<compile_context>
chip_gen: v7x
topology: tpu7x:2x2x1
jax: 0.10.0
libtpu: 0.0.40
codegen_flags: <defaults>
</compile_context>

<pallas_src>
import jax
import jax.numpy as jnp
from jax import lax
from jax.experimental import pallas as pl
from jax.experimental.pallas import tpu as pltpu

EPS = 1e-5


def _bn_kernel(x_ref, gamma_ref, beta_ref, o_ref):
    # x_ref: (N, tc, S) block of channel-tiled activations
    # gamma_ref / beta_ref: (1, tc, 1) per-channel affine params
    x = x_ref[...]
    n = x.shape[0] * x.shape[2]
    inv_n = 1.0 / n

    # --- single stats sweep: per-channel sum and sum of squares -------------
    s1 = jnp.sum(jnp.sum(x, axis=2, keepdims=True), axis=0, keepdims=True)
    s2 = jnp.sum(jnp.sum(x * x, axis=2, keepdims=True), axis=0, keepdims=True)
    mean = s1 * inv_n
    var = jnp.maximum(s2 * inv_n - mean * mean, 0.0)   # biased var (PyTorch train BN)
    inv_std = lax.rsqrt(var + EPS)

    # --- fold affine into per-channel scale / shift --------------------------
    scale = gamma_ref[...] * inv_std                   # (1, tc, 1)
    shift = beta_ref[...] - mean * scale               # (1, tc, 1)

    # --- normalize sweep: one mul + one add per element ----------------------
    o_ref[...] = x * scale + shift


def _round_up(v, m):
    return ((v + m - 1) // m) * m


def _choose_tc(N, C, S, itemsize, vmem_budget_bytes=8 * 1024 * 1024):
    """Largest channel tile that (a) is a multiple of 8 and divides C,
    (b) keeps 2 input + 2 output double-buffered tiles (incl. lane padding to
    128) within a conservative VMEM budget valid on v5e/v6e/v7x, and
    (c) leaves >= 2 grid steps so v7x megacore can split the channel axis."""
    if C % 8 != 0:
        return C  # block must equal the full channel extent in this case

    per_chan_bytes = N * _round_up(S, 128) * itemsize  # VMEM footprint per channel row
    tc = 8
    for cand in range(8, C + 1, 8):
        if 4 * cand * per_chan_bytes > vmem_budget_bytes:
            break
        if C % cand == 0:
            tc = cand

    # Prefer at least 2 grid steps (megacore sharding on v7x).
    if C // tc < 2:
        for cand in range(tc - 8, 7, -8):
            if C % cand == 0:
                tc = cand
                break
    return tc


def batchnorm2d(x_nchw, gamma, beta, *, tc=None):
    """Training-mode BatchNorm2d: batch mean / biased var over (N, H, W) + affine.

    x_nchw: (N, C, H, W) float32; gamma/beta: (C,) float32.
    """
    N, C, H, W = x_nchw.shape
    S = H * W

    # Free, contiguous reshape — no transpose, no extra HBM pass.
    x = x_nchw.reshape(N, C, S)
    g = gamma.reshape(1, C, 1).astype(x.dtype)
    b = beta.reshape(1, C, 1).astype(x.dtype)

    if tc is None:
        tc = _choose_tc(N, C, S, jnp.dtype(x.dtype).itemsize)
    assert C % tc == 0, "channel tile must divide C"

    # TODO(synk): for very large N*H*W a second ("arbitrary") grid axis over the
    # spatial dimension with VMEM sum/sumsq accumulators would decouple tile
    # size from reduction size; unnecessary for this module (N*H*W = 49).

    out = pl.pallas_call(
        _bn_kernel,
        out_shape=jax.ShapeDtypeStruct((N, C, S), x.dtype),
        grid_spec=pltpu.PrefetchScalarGridSpec(
            num_scalar_prefetch=0,
            grid=(C // tc,),
            in_specs=[
                pl.BlockSpec((N, tc, S), lambda i: (0, i, 0)),
                pl.BlockSpec((1, tc, 1), lambda i: (0, i, 0)),
                pl.BlockSpec((1, tc, 1), lambda i: (0, i, 0)),
            ],
            out_specs=pl.BlockSpec((N, tc, S), lambda i: (0, i, 0)),
        ),
        compiler_params=pltpu.CompilerParams(
            dimension_semantics=("parallel",),
            vmem_limit_bytes=32 * 1024 * 1024,
        ),
    )(x, g, b)

    return out.reshape(N, C, H, W)


# TODO(synk): PyTorch's running_mean/running_var buffer update (momentum=0.1,
# track_running_stats=True) is a training-time side effect that does not affect
# the returned tensor; it is not implemented here.


if __name__ == "__main__":
    # Small shapes consistent with the module (original input was [1, 2688, 7, 7]).
    N, C, H, W = 2, 64, 16, 16
    key = jax.random.PRNGKey(0)
    kx, kg, kb = jax.random.split(key, 3)

    x = jax.random.normal(kx, (N, C, H, W), dtype=jnp.float32)
    # PyTorch inits weight=1, bias=0; perturb slightly so the affine path is exercised.
    gamma = 1.0 + 0.1 * jax.random.normal(kg, (C,), dtype=jnp.float32)
    beta = 0.1 * jax.random.normal(kb, (C,), dtype=jnp.float32)

    out = batchnorm2d(x, gamma, beta)
    out = jax.block_until_ready(out)

    # Pure-JAX reference (training-mode BN: batch mean / biased var over N,H,W).
    mean = jnp.mean(x, axis=(0, 2, 3), keepdims=True)
    var = jnp.mean((x - mean) ** 2, axis=(0, 2, 3), keepdims=True)
    ref = (x - mean) / jnp.sqrt(var + EPS) * gamma[None, :, None, None] + beta[None, :, None, None]

    assert out.shape == ref.shape
    assert jnp.allclose(out, ref, atol=1e-4, rtol=1e-4), "mismatch vs reference"

    print("KERNEL_OK")
</pallas_src>

<mosaic_0001>
module attributes {stable_mosaic.version = 11 : i64} {
  func.func @_bn_kernel(%arg0: i32, %arg1: memref<2x32x256xf32, #tpu.memory_space<vmem>>, %arg2: memref<1x32x1xf32, #tpu.memory_space<vmem>>, %arg3: memref<1x32x1xf32, #tpu.memory_space<vmem>>, %arg4: memref<2x32x256xf32, #tpu.memory_space<vmem>>) attributes {dimension_semantics = [#tpu.dimension_semantics<parallel>], iteration_bounds = array<i64: 2>, scalar_prefetch = 0 : i64, scratch_operands = 0 : i64, tpu.core_type = #tpu.core_type<tc>, window_params = [{transform_indices = @transform_0, window_bounds = array<i64: 2, 32, 256>}, {transform_indices = @transform_1, window_bounds = array<i64: 1, 32, 1>}, {transform_indices = @transform_2, window_bounds = array<i64: 1, 32, 1>}, {transform_indices = @transform_3, window_bounds = array<i64: 2, 32, 256>}]} {
    %c0 = arith.constant 0 : index
    %c0_0 = arith.constant 0 : index
    %c0_1 = arith.constant 0 : index
    %0 = vector.load %arg1[%c0, %c0_0, %c0_1] : memref<2x32x256xf32, #tpu.memory_space<vmem>>, vector<2x32x256xf32>
    %cst = arith.constant dense<0.000000e+00> : vector<2x32xf32>
    %1 = vector.multi_reduction <add>, %0, %cst [2] : vector<2x32x256xf32> to vector<2x32xf32>
    %2 = vector.shape_cast %1 : vector<2x32xf32> to vector<2x32x1xf32>
    %cst_2 = arith.constant dense<0.000000e+00> : vector<32x1xf32>
    %3 = vector.multi_reduction <add>, %2, %cst_2 [0] : vector<2x32x1xf32> to vector<32x1xf32>
    %4 = vector.shape_cast %3 : vector<32x1xf32> to vector<1x32x1xf32>
    %5 = arith.mulf %0, %0 : vector<2x32x256xf32>
    %cst_3 = arith.constant dense<0.000000e+00> : vector<2x32xf32>
    %6 = vector.multi_reduction <add>, %5, %cst_3 [2] : vector<2x32x256xf32> to vector<2x32xf32>
    %7 = vector.shape_cast %6 : vector<2x32xf32> to vector<2x32x1xf32>
    %cst_4 = arith.constant dense<0.000000e+00> : vector<32x1xf32>
    %8 = vector.multi_reduction <add>, %7, %cst_4 [0] : vector<2x32x1xf32> to vector<32x1xf32>
    %9 = vector.shape_cast %8 : vector<32x1xf32> to vector<1x32x1xf32>
    %cst_5 = arith.constant 0.001953125 : f32
    %10 = vector.broadcast %cst_5 : f32 to vector<1x32x1xf32>
    %11 = arith.mulf %4, %10 : vector<1x32x1xf32>
    %cst_6 = arith.constant 0.001953125 : f32
    %12 = vector.broadcast %cst_6 : f32 to vector<1x32x1xf32>
    %13 = arith.mulf %9, %12 : vector<1x32x1xf32>
    %14 = arith.mulf %11, %11 : vector<1x32x1xf32>
    %15 = arith.subf %13, %14 : vector<1x32x1xf32>
    %cst_7 = arith.constant 0.000000e+00 : f32
    %16 = vector.broadcast %cst_7 : f32 to vector<1x32x1xf32>
    %17 = arith.maximumf %15, %16 : vector<1x32x1xf32>
    %cst_8 = arith.constant 9.99999974E-6 : f32
    %18 = vector.broadcast %cst_8 : f32 to vector<1x32x1xf32>
    %19 = arith.addf %17, %18 : vector<1x32x1xf32>
    %20 = math.rsqrt %19 : vector<1x32x1xf32>
    %c0_9 = arith.constant 0 : index
    %c0_10 = arith.constant 0 : index
    %c0_11 = arith.constant 0 : index
    %21 = vector.load %arg2[%c0_9, %c0_10, %c0_11] : memref<1x32x1xf32, #tpu.memory_space<vmem>>, vector<1x32x1xf32>
    %22 = arith.mulf %21, %20 : vector<1x32x1xf32>
    %c0_12 = arith.constant 0 : index
    %c0_13 = arith.constant 0 : index
    %c0_14 = arith.constant 0 : index
    %23 = vector.load %arg3[%c0_12, %c0_13, %c0_14] : memref<1x32x1xf32, #tpu.memory_space<vmem>>, vector<1x32x1xf32>
    %24 = arith.mulf %11, %22 : vector<1x32x1xf32>
    %25 = arith.subf %23, %24 : vector<1x32x1xf32>
    %26 = vector.broadcast %22 : vector<1x32x1xf32> to vector<2x32x256xf32>
    %27 = arith.mulf %0, %26 : vector<2x32x256xf32>
    %28 = vector.broadcast %25 : vector<1x32x1xf32> to vector<2x32x256xf32>
    %29 = arith.addf %27, %28 : vector<2x32x256xf32>
    %c0_15 = arith.constant 0 : index
    %c0_16 = arith.constant 0 : index
    %c0_17 = arith.constant 0 : index
    %30 = vector.load %arg4[%c0_15, %c0_16, %c0_17] : memref<2x32x256xf32, #tpu.memory_space<vmem>>, vector<2x32x256xf32>
    tpu.vector_store %arg4[%c0_15, %c0_16, %c0_17], %29 {strides = array<i32>} : memref<2x32x256xf32, #tpu.memory_space<vmem>>, vector<2x32x256xf32>,
    return
  }
  func.func @transform_0(%arg0: i32) -> (i32, i32, i32) {
    %c0_i32 = arith.constant 0 : i32
    %c0_i32_0 = arith.constant 0 : i32
    %c0_i32_1 = arith.constant 0 : i32
    return %c0_i32, %arg0, %c0_i32_0 : i32, i32, i32
  }
  func.func @transform_1(%arg0: i32) -> (i32, i32, i32) {
    %c0_i32 = arith.constant 0 : i32
    %c0_i32_0 = arith.constant 0 : i32
    %c0_i32_1 = arith.constant 0 : i32
    return %c0_i32, %arg0, %c0_i32_0 : i32, i32, i32
  }
  func.func @transform_2(%arg0: i32) -> (i32, i32, i32) {
    %c0_i32 = arith.constant 0 : i32
    %c0_i32_0 = arith.constant 0 : i32
    %c0_i32_1 = arith.constant 0 : i32
    return %c0_i32, %arg0, %c0_i32_0 : i32, i32, i32
  }
  func.func @transform_3(%arg0: i32) -> (i32, i32, i32) {
    %c0_i32 = arith.constant 0 : i32
    %c0_i32_0 = arith.constant 0 : i32
    %c0_i32_1 = arith.constant 0 : i32
    return %c0_i32, %arg0, %c0_i32_0 : i32, i32, i32
  }
}

</mosaic_0001>

<bundles_post_ra>
// kernel: tpu_custom_call.1
= control target key start
LH: loop header
LB: loop body
LE: loop exit
PB: predicated region body
PF: predicated region fallthrough
CT: control target
= control target key end

     0   :  { %8 = vsyncpa [#allocation3], 0  ;;  %s1063_s0 = inlined_call_operand.hbm [shape: f32[2,64,256], index: 0, kind: input, shape index: {}]   ;;  %s1064_s1 = inlined_call_operand.vmem [shape: f32[1,64,1], index: 1, kind: input, shape index: {}]   ;;  %s1065_s2 = inlined_call_operand.vmem [shape: f32[1,64,1], index: 2, kind: input, shape index: {}]   ;;  %s1066_s3 = inlined_call_operand.hbm [shape: f32[2,64,256], index: 3, kind: output, shape index: {}]  }
   0x1   :  { %10 = vsyncpa [#allocation3 + $0x1], 0 }
   0x2   :  { %11 = vsyncpa [#allocation4], 0 }
   0x3   :  { %13 = vsyncpa [#allocation4 + $0x1], 0  ;;  %s804_s12 = smov 0   ;;  %s806_s13 = smov 0  }
   0x4   :  { %s808_s14 = smov 0   ;;  %s810_s15 = smov 0  }
   0x5 LB: > { %s825_s16 = sadd.s32 4294967295, %s768_s15   ;;  %s626_s17 = sadd.s32 4294967294, %s768_s15   ;;  %s768_s15 = sphi %s810_s15, %s1074_s15   ;;  %s764_s14 = sphi %s808_s14, %s1073_s14   ;;  %s760_s13 = sphi %s806_s13, %s1072_s13   ;;  %s756_s12 = sphi %s804_s12, %s1071_s12  }
   0x6   : > { %s829_s18 = sadd.s32 1, %s768_s15   ;;  %s26_s19 = sadd.s32 1, %s764_s14 }
   0x7   : > { %s23_s20 = ssub.s32 %s768_s15, %s829_s18  ;;  %p33_p0 = scmp.ne.s32.totalorder %s764_s14, %s760_s13 }
   0x8   : > { %p24_p1 = scmp.eq.s32.totalorder %s23_s20, 0  ;;  %p34_p2 = scmp.eq.s32.totalorder %s768_s15, 0 }
   0x9   : > { %p39_p3 = scmp.ne.s32.totalorder %s760_s13, %s756_s12  ;;  %p40_p4 = scmp.eq.s32.totalorder %s825_s16, 0 }
   0xa   : > { %s841_s21 = scalar_select %p24_p1, %s764_s14, %s26_s19  }
   0xb   : > { %p843_p5 = por %p34_p2, %p33_p0  ;;  %p847_p6 = por %p40_p4, %p39_p3 }
   0xc   : > { %p115_p7 = scmp.eq.s32.totalorder %s825_s16, 1  ;;  %p121_p8 = scmp.eq.s32.totalorder %s626_s17, 1 }
   0xd   : > { %p628_p11 = scmp.ge.s32.totalorder %s768_s15, 2 }
   0xe   : > { %p852_p9 = por %p115_p7, %p33_p0  ;;  %p856_p10 = por %p121_p8, %p39_p3 }
   0xf   : > { %137 = sbr.rel (%p628_p11) target bundleno = 35 (0x23), region = 16 }
  0x16   : > { %s141_s26 = sand.u32 1, %s764_s14   ;;  %s649_s27 = sshll.u32 %s768_s15, 10 }
  0x17   : > { %s629_s28 = sshll.u32 %s141_s26, 7  ;;  %s152_s4 = scalar_lea.hbm %s1063_s0, %s649_s27 }
  0x18   : > { %s652_s5 = scalar_select %p843_p5, [#allocation0], [#allocation10] }
  0x19   : > { %s145_s6 = scalar_lea.vmem [#allocation2], %s629_s28  ;;  %s770_s9 = smov 2048  }
  0x1a   : > { %s165_s7 = sshll.u32 %s145_s6, 4  ;;  %s157_s8 = sld [smem:[%s652_s5]]   ;;  %s166_s7 = int_to_ptr.vmem [resolvable:$true] %s165_s7 }
  0x1b   : > { %653 = sst [smem:[#allocation7]] (%p843_p5), %s770_s9  ;;  %s771_s10 = smov 1024  }
  0x1c   : > { %654 = sst [smem:[#allocation7 + $0x1]] (%p843_p5), %s771_s10  ;;  %s772_s11 = smov 4  }
  0x1d   : > { %655 = sst [smem:[#allocation7 + $0x2]] (%p843_p5), %s772_s11  ;;  %s773_s17 = smov 256  }
  0x1e   : > { %656 = sst [smem:[#allocation7 + $0x3]] (%p843_p5), %s773_s17  ;;  %s774_s20 = smov 16  }
  0x1f   : > { %657 = sst [smem:[#allocation7 + $0x4]] (%p843_p5), %s773_s17  ;;  %s142_s28 = scalar_lea.sflag [#allocation3], %s141_s26 }
  0x20   : > { %s633_s19 = sshll.u32 %s157_s8, 26  ;;  %658 = sst [smem:[#allocation7 + $0x5]] (%p843_p5), %s774_s20 }
  0x21   : > { %s634_s27 = sadd.s32 134217728, %s633_s19  ;;  %s775_s29 = smov [#allocation6]  }
  0x22   : > { %659 = dma.general (%p843_p5), %s152_s4, 2048, %s166_s7, %s142_s28, %s775_s29, [#allocation7], %s634_s27, 0  }
  0x23 PF: > { %p635_p12 = scmp.ge.s32.totalorder %s768_s15, 1  ;;  %p204_p13 = scmp.lt.s32.totalorder %s768_s15, 3 }
  0x25   : > { %p205_p0 = pnand %p635_p12, %p204_p13 }
  0x26   : > { %s887_s30 = sand.u32 (!%p205_p0), 1, %s760_s13  }
  0x27   : > { %208 = sbr.rel (%p205_p0) target bundleno = 405 (0x195), region = 32  ;;  %s636_s5 = sshll.u32 (!%p205_p0), %s887_s30, 7 }
  0x28   : > { %s211_s6 = scalar_lea.sflag (!%p205_p0), [#allocation3], %s887_s30  ;;  %s214_s26 = scalar_lea.vmem (!%p205_p0), [#allocation2], %s636_s5 }
  0x2e   : > { %747 = dma.done.wait (%p847_p6), %s211_s6, 2048  }
  0x2f   : > { %749 = vsyncadd (%p847_p6), %s211_s6, 4294965248  ;;  %v897_v0 = vld [vmem:[%s214_s26 + $0x20] sm:$0xff]  ;;  %v899_v1 = vld [vmem:[%s214_s26 + $0x28] sm:$0xff]  ;;  %v776_v48 = vmov 0   ;;  %s638_s22 = sshll.u32 %s825_s16, 2  ;;  %s999_s17 = scalar_lea.vmem [#allocation5], %s636_s5 }
  0x30   : > { %v901_v2 = vld [vmem:[%s214_s26] sm:$0xff]  ;;  %v283_v3 = vadd.f32 %v899_v1, %v897_v0  ;;  %v905_v4 = vld [vmem:[%s214_s26 + $0x8] sm:$0xff]  ;;  %v907_v5 = vld [vmem:[%s214_s26 + $0x30] sm:$0xff]  ;;  %v309_v32 = vmul.f32 %v897_v0, %v897_v0  ;;  %v310_v33 = vmul.f32 %v899_v1, %v899_v1  ;;  %721 = vset.pattern.permute.xlu1 %v776_v48  ;;  %720 = vset.pattern.permute.xlu0 %v776_v48  ;;  %p249_p1 = scmp.lt.s32.totalorder %s638_s22, 7  ;;  %s486_s19 = scalar_lea.sflag [#allocation4], %s887_s30 }
  0x31   : > { %v909_v6 = vld [vmem:[%s214_s26 + $0x38] sm:$0xff]  ;;  %v277_v7 = vadd.f32 %v905_v4, %v901_v2  ;;  %v913_v8 = vld [vmem:[%s214_s26 + $0x10] sm:$0xff]  ;;  %v925_v14 = vld [vmem:[%s214_s26 + $0x40] sm:$0xff]  ;;  %v305_v26 = vmul.f32 %v901_v2, %v901_v2  ;;  %v306_v27 = vmul.f32 %v905_v4, %v905_v4  ;;  %v311_v29 = vmul.f32 %v907_v5, %v907_v5 }
  0x32   : > { %v915_v9 = vld [vmem:[%s214_s26 + $0x18] sm:$0xff]  ;;  %284 = vadd.xlane.f32.xlu1 %v283_v3  ;;  %v286_v10 = vadd.f32 %v909_v6, %v907_v5  ;;  %v921_v12 = vld [vmem:[%s214_s26 + $0x50] sm:$0xff]  ;;  %v927_v15 = vld [vmem:[%s214_s26 + $0x48] sm:$0xff]  ;;  %v307_v23 = vmul.f32 %v913_v8, %v913_v8  ;;  %v312_v30 = vmul.f32 %v909_v6, %v909_v6  ;;  %v327_v37 = vadd.f32 %v310_v33, %v309_v32  ;;  %s1076_s22 = smov (!%p249_p1, %s638_s22), 7 }
  0x33   : > { %278 = vadd.xlane.f32.xlu0 %v277_v7  ;;  %v280_v11 = vadd.f32 %v915_v9, %v913_v8  ;;  %v923_v13 = vld [vmem:[%s214_s26 + $0x58] sm:$0xff]  ;;  %v289_v17 = vadd.f32 %v927_v15, %v925_v14  ;;  %v933_v18 = vld [vmem:[%s214_s26 + $0x70] sm:$0xff]  ;;  %v937_v20 = vld [vmem:[%s214_s26 + $0x60] sm:$0xff]  ;;  %v308_v24 = vmul.f32 %v915_v9, %v915_v9  ;;  %v321_v31 = vadd.f32 %v306_v27, %v305_v26  ;;  %s639_s23 = sshll.u32 %s1076_s22, 3 }
  0x34   : > { %v292_v16 = vadd.f32 %v923_v13, %v921_v12  ;;  %v935_v19 = vld [vmem:[%s214_s26 + $0x78] sm:$0xff]  ;;  %v939_v21 = vld [vmem:[%s214_s26 + $0x68] sm:$0xff]  ;;  %v330_v34 = vadd.f32 %v312_v30, %v311_v29  ;;  %v315_v35 = vmul.f32 %v921_v12, %v921_v12  ;;  %v316_v36 = vmul.f32 %v923_v13, %v923_v13  ;;  %s252_s8 = scalar_lea.vmem %s1064_s1, %s639_s23  ;;  %s258_s11 = scalar_lea.vmem %s1065_s2, %s639_s23 }
  0x35   : > { %v298_v22 = vadd.f32 %v935_v19, %v933_v18  ;;  %v295_v25 = vadd.f32 %v939_v21, %v937_v20  ;;  %v324_v28 = vadd.f32 %v308_v24, %v307_v23  ;;  %v313_v38 = vmul.f32 %v925_v14, %v925_v14 }
  0x36   : > { %287 = vadd.xlane.f32.xlu1 %v286_v10  ;;  %v314_v39 = vmul.f32 %v927_v15, %v927_v15  ;;  %v336_v40 = vadd.f32 %v316_v36, %v315_v35  ;;  %v319_v41 = vmul.f32 %v933_v18, %v933_v18  ;;  %v320_v42 = vmul.f32 %v935_v19, %v935_v19 }
  0x37   : > { %281 = vadd.xlane.f32.xlu0 %v280_v11  ;;  %v317_v44 = vmul.f32 %v937_v20, %v937_v20  ;;  %v318_v45 = vmul.f32 %v939_v21, %v939_v21 }
  0x38   : > { %v333_v43 = vadd.f32 %v314_v39, %v313_v38  ;;  %v342_v46 = vadd.f32 %v320_v42, %v319_v41 }
  0x39   : > { %v339_v47 = vadd.f32 %v318_v45, %v317_v44 }
  0x3a   : > { %293 = vadd.xlane.f32.xlu1 %v292_v16 }
  0x3b   : > { %290 = vadd.xlane.f32.xlu0 %v289_v17 }
  0x3e   : > { %299 = vadd.xlane.f32.xlu1 %v298_v22 }
  0x3f   : > { %296 = vadd.xlane.f32.xlu0 %v295_v25 }
  0x42   : > { %325 = vadd.xlane.f32.xlu1 %v324_v28 }
  0x43   : > { %322 = vadd.xlane.f32.xlu0 %v321_v31 }
  0x46   : > { %331 = vadd.xlane.f32.xlu1 %v330_v34 }
  0x47   : > { %328 = vadd.xlane.f32.xlu0 %v327_v37 }
  0x4a   : > { %337 = vadd.xlane.f32.xlu1 %v336_v40 }
  0x4b   : > { %334 = vadd.xlane.f32.xlu0 %v333_v43 }
  0x4e   : > { %343 = vadd.xlane.f32.xlu1 %v342_v46 }
  0x4f   : > { %340 = vadd.xlane.f32.xlu0 %v339_v47 }
  0xbf   : > { %v285_v49 = vpop.xlane.xlu1 %284 }
  0xc0   : > { %v279_v50 = vpop.xlane.xlu0 %278 }
  0xc3   : > { %v288_v51 = vpop.xlane.xlu1 %287 }
  0xc4   : > { %v282_v52 = vpop.xlane.xlu0 %281 }
  0xc7   : > { %v294_v53 = vpop.xlane.xlu1 %293 }
  0xc8   : > { %v291_v54 = vpop.xlane.xlu0 %290  ;;  %v302_v59 = vadd.f32 %v294_v53, %v282_v52 }
  0xc9   : > { %v301_v60 = vadd.f32 %v291_v54, %v279_v50  ;;  %v377_v50 = vld [vmem:[%s252_s8] sm:$0xff] }
  0xca   : > { %v977_v63 = vmul.f32 0.001953125, %v302_v59  ;;  %v380_v59 = vld [vmem:[%s252_s8 + $0x18] sm:$0xff] }
  0xcb   : > { %v300_v55 = vpop.xlane.xlu1 %299  ;;  %v349_v7 = vmul.f32 0.001953125, %v301_v60 }
  0xcc   : > { %v297_v56 = vpop.xlane.xlu0 %296  ;;  %v304_v3 = vadd.f32 %v300_v55, %v288_v51  ;;  %v358_v23 = vmul.f32 %v977_v63, %v977_v63  ;;  %v379_v55 = vld [vmem:[%s252_s8 + $0x10] sm:$0xff] }
  0xcd   : > { %v303_v10 = vadd.f32 %v297_v56, %v285_v49  ;;  %v357_v26 = vmul.f32 %v349_v7, %v349_v7  ;;  %v378_v49 = vld [vmem:[%s252_s8 + $0x8] sm:$0xff] }
  0xce   : > { %v352_v24 = vmul.f32 0.001953125, %v304_v3 }
  0xcf   : > { %v326_v57 = vpop.xlane.xlu1 %325  ;;  %v351_v27 = vmul.f32 0.001953125, %v303_v10 }
  0xd0   : > { %v323_v58 = vpop.xlane.xlu0 %322  ;;  %v360_v35 = vmul.f32 %v352_v24, %v352_v24 }
  0xd1   : > { %v359_v38 = vmul.f32 %v351_v27, %v351_v27 }
  0xd3   : > { %v332_v61 = vpop.xlane.xlu1 %331 }
  0xd4   : > { %v329_v62 = vpop.xlane.xlu0 %328 }
  0xd7   : > { %v338_v11 = vpop.xlane.xlu1 %337 }
  0xd8   : > { %v346_v16 = vadd.f32 %v338_v11, %v326_v57  ;;  %v335_v17 = vpop.xlane.xlu0 %334  ;;  %v386_v11 = vld [vmem:[%s258_s11 + $0x8] sm:$0xff] }
  0xd9   : > { %v345_v22 = vadd.f32 %v335_v17, %v323_v58 }
  0xda   : > { %v354_v25 = vmul.f32 0.001953125, %v346_v16 }
  0xdb   : > { %v353_v28 = vmul.f32 0.001953125, %v345_v22  ;;  %v344_v29 = vpop.xlane.xlu1 %343  ;;  %v387_v22 = vld [vmem:[%s258_s11 + $0x10] sm:$0xff] }
  0xdc   : > { %v362_v30 = vsub.f32 %v354_v25, %v358_v23  ;;  %v348_v31 = vadd.f32 %v344_v29, %v332_v61  ;;  %v341_v32 = vpop.xlane.xlu0 %340 }
  0xdd   : > { %v361_v33 = vsub.f32 %v353_v28, %v357_v26  ;;  %v347_v34 = vadd.f32 %v341_v32, %v329_v62  ;;  %v385_v62 = vld [vmem:[%s258_s11] sm:$0xff]  ;;  %v388_v26 = vld [vmem:[%s258_s11 + $0x18] sm:$0xff] }
  0xde   : > { %v366_v36 = vmax.f32 %v362_v30, 0.0  ;;  %v356_v37 = vmul.f32 0.001953125, %v348_v31 }
  0xdf   : > { %v365_v39 = vmax.f32 %v361_v33, 0.0  ;;  %v355_v40 = vmul.f32 0.001953125, %v347_v34 }
  0xe0   : > { %v370_v41 = vadd.f32 1e-05, %v366_v36  ;;  %v364_v42 = vsub.f32 %v356_v37, %v360_v35 }
  0xe1   : > { %v369_v43 = vadd.f32 1e-05, %v365_v39  ;;  %v363_v44 = vsub.f32 %v355_v40, %v359_v38 }
  0xe2   : > { %722 = vrsqrt.f32 %v370_v41  ;;  %v368_v45 = vmax.f32 %v364_v42, 0.0 }
  0xe3   : > { %724 = vrsqrt.f32 %v369_v43  ;;  %v367_v46 = vmax.f32 %v363_v44, 0.0 }
  0xe4   : > { %v372_v47 = vadd.f32 1e-05, %v368_v45 }
  0xe5   : > { %v371_v48 = vadd.f32 1e-05, %v367_v46 }
  0xe7   : > { %726 = vrsqrt.f32 %v371_v48 }
  0xe8   : > { %728 = vrsqrt.f32 %v372_v47 }
  0xec   : > { %v723_v51 = vpop.eup %722 }
  0xed   : > { %v725_v52 = vpop.eup %724  ;;  %v382_v53 = vmul.f32 %v723_v51, %v378_v49 }
  0xee   : > { %v381_v54 = vmul.f32 %v725_v52, %v377_v50 }
  0xef   : > { %404 = vperm.xlu1 %721, %v382_v53   ;;  %v390_v10 = vmul.f32 %v382_v53, %v977_v63 }
  0xf0   : > { %399 = vperm.xlu0 %720, %v381_v54   ;;  %v389_v61 = vmul.f32 %v381_v54, %v349_v7 }
  0xf1   : > { %v727_v56 = vpop.eup %726  ;;  %v394_v16 = vsub.f32 %v386_v11, %v390_v10 }
  0xf2   : > { %v383_v57 = vmul.f32 %v727_v56, %v379_v55  ;;  %v729_v58 = vpop.eup %728  ;;  %v393_v3 = vsub.f32 %v385_v62, %v389_v61 }
  0xf3   : > { %v384_v60 = vmul.f32 %v729_v58, %v380_v59 }
  0xf4   : > { %409 = vperm.xlu1 %721, %v383_v57   ;;  %v391_v17 = vmul.f32 %v383_v57, %v351_v27 }
  0xf5   : > { %v392_v25 = vmul.f32 %v384_v60, %v352_v24 }
  0xf6   : > { %v395_v23 = vsub.f32 %v387_v22, %v391_v17 }
  0xf7   : > { %v396_v28 = vsub.f32 %v388_v26, %v392_v25 }
  0xf8   : > { %414 = vperm.xlu1 %721, %v384_v60  }
  0xfc   : > { %435 = vperm.xlu1 %721, %v393_v3  }
 0x100   : > { %440 = vperm.xlu1 %721, %v394_v16  }
 0x104   : > { %445 = vperm.xlu1 %721, %v395_v23  }
 0x108   : > { %450 = vperm.xlu1 %721, %v396_v28  }
 0x16e   : > { %v405_v29 = vpop.permute.xlu1 %404 }
 0x16f   : > { %v400_v7 = vpop.permute.xlu0 %399  ;;  %v419_v38 = vmul.f32 %v405_v29, %v913_v8  ;;  %v420_v39 = vmul.f32 %v405_v29, %v915_v9  ;;  %v427_v40 = vmul.f32 %v405_v29, %v921_v12  ;;  %v428_v41 = vmul.f32 %v405_v29, %v923_v13 }
 0x170   : > { %v417_v32 = vmul.f32 %v400_v7, %v901_v2  ;;  %v418_v63 = vmul.f32 %v400_v7, %v905_v4  ;;  %v425_v33 = vmul.f32 %v400_v7, %v925_v14  ;;  %v426_v27 = vmul.f32 %v400_v7, %v927_v15 }
 0x173   : > { %v410_v30 = vpop.permute.xlu1 %409 }
 0x174   : > { %v421_v13 = vmul.f32 %v410_v30, %v897_v0  ;;  %v422_v14 = vmul.f32 %v410_v30, %v899_v1  ;;  %v429_v15 = vmul.f32 %v410_v30, %v937_v20  ;;  %v430_v42 = vmul.f32 %v410_v30, %v939_v21 }
 0x177   : > { %v415_v31 = vpop.permute.xlu1 %414 }
 0x178   : > { %v423_v0 = vmul.f32 %v415_v31, %v907_v5  ;;  %v424_v1 = vmul.f32 %v415_v31, %v909_v6  ;;  %v431_v20 = vmul.f32 %v415_v31, %v933_v18  ;;  %v432_v21 = vmul.f32 %v415_v31, %v935_v19 }
 0x17b   : > { %v436_v34 = vpop.permute.xlu1 %435 }
 0x17c   : > { %v453_v35 = vadd.f32 %v436_v34, %v417_v32  ;;  %v454_v24 = vadd.f32 %v436_v34, %v418_v63  ;;  %v461_v36 = vadd.f32 %v436_v34, %v425_v33  ;;  %v462_v37 = vadd.f32 %v436_v34, %v426_v27 }
 0x17e   : > { %469 = vst [vmem:[%s999_s17] sm:$0xff] %v453_v35  ;;  %470 = vst [vmem:[%s999_s17 + $0x8] sm:$0xff] %v454_v24 }
 0x17f   : > { %477 = vst [vmem:[%s999_s17 + $0x40] sm:$0xff] %v461_v36  ;;  %478 = vst [vmem:[%s999_s17 + $0x48] sm:$0xff] %v462_v37  ;;  %v441_v2 = vpop.permute.xlu1 %440 }
 0x180   : > { %v455_v4 = vadd.f32 %v441_v2, %v419_v38  ;;  %v456_v8 = vadd.f32 %v441_v2, %v420_v39  ;;  %v463_v9 = vadd.f32 %v441_v2, %v427_v40  ;;  %v464_v12 = vadd.f32 %v441_v2, %v428_v41 }
 0x182   : > { %471 = vst [vmem:[%s999_s17 + $0x10] sm:$0xff] %v455_v4  ;;  %472 = vst [vmem:[%s999_s17 + $0x18] sm:$0xff] %v456_v8 }
 0x183   : > { %479 = vst [vmem:[%s999_s17 + $0x50] sm:$0xff] %v463_v9  ;;  %480 = vst [vmem:[%s999_s17 + $0x58] sm:$0xff] %v464_v12  ;;  %v446_v43 = vpop.permute.xlu1 %445 }
 0x184   : > { %v457_v44 = vadd.f32 %v446_v43, %v421_v13  ;;  %v458_v45 = vadd.f32 %v446_v43, %v422_v14  ;;  %v465_v46 = vadd.f32 %v446_v43, %v429_v15  ;;  %v466_v47 = vadd.f32 %v446_v43, %v430_v42 }
 0x186   : > { %473 = vst [vmem:[%s999_s17 + $0x20] sm:$0xff] %v457_v44  ;;  %474 = vst [vmem:[%s999_s17 + $0x28] sm:$0xff] %v458_v45 }
 0x187   : > { %481 = vst [vmem:[%s999_s17 + $0x60] sm:$0xff] %v465_v46  ;;  %482 = vst [vmem:[%s999_s17 + $0x68] sm:$0xff] %v466_v47  ;;  %v451_v48 = vpop.permute.xlu1 %450 }
 0x188   : > { %v459_v49 = vadd.f32 %v451_v48, %v423_v0  ;;  %v460_v50 = vadd.f32 %v451_v48, %v424_v1  ;;  %v467_v51 = vadd.f32 %v451_v48, %v431_v20  ;;  %v468_v52 = vadd.f32 %v451_v48, %v432_v21 }
 0x18a   : > { %475 = vst [vmem:[%s999_s17 + $0x30] sm:$0xff] %v459_v49  ;;  %476 = vst [vmem:[%s999_s17 + $0x38] sm:$0xff] %v460_v50 }
 0x18b   : > { %483 = vst [vmem:[%s999_s17 + $0x70] sm:$0xff] %v467_v51  ;;  %484 = vst [vmem:[%s999_s17 + $0x78] sm:$0xff] %v468_v52 }
 0x18c   : > { %s651_s20 = sshll.u32 %s825_s16, 10  ;;  %s516_s27 = sshll.u32 %s999_s17, 4  ;;  %s517_s27 = int_to_ptr.vmem [resolvable:$true] %s516_s27 }
 0x18d   : > { %s499_s5 = scalar_lea.hbm %s1066_s3, %s651_s20  ;;  %s777_s6 = smov 1024  }
 0x18e   : > { %661 = sst [smem:[#allocation9]] (%p852_p9), %s777_s6  ;;  %s778_s30 = smov 2048  }
 0x18f   : > { %662 = sst [smem:[#allocation9 + $0x1]] (%p852_p9), %s778_s30  ;;  %s779_s26 = smov 4  }
 0x190   : > { %663 = sst [smem:[#allocation9 + $0x2]] (%p852_p9), %s779_s26  ;;  %s780_s22 = smov 256  }
 0x191   : > { %664 = sst [smem:[#allocation9 + $0x3]] (%p852_p9), %s780_s22  ;;  %s781_s16 = smov 16  }
 0x192   : > { %665 = sst [smem:[#allocation9 + $0x4]] (%p852_p9), %s780_s22  ;;  %s782_s23 = smov [#allocation8]  }
 0x193   : > { %666 = sst [smem:[#allocation9 + $0x5]] (%p852_p9), %s781_s16  ;;  %s783_s4 = smov 0  }
 0x194   : > { %667 = dma.general (%p852_p9), %s517_s27, 2048, %s499_s5, %s486_s19, %s782_s23, [#allocation9], %s783_s4, 0  }
 0x195 PF: > { %s544_s7 = sand.u32 1, %s756_s12   ;;  %p670_p2 = pnand %p628_p11, %p856_p10 }
 0x196   : > { %s545_s8 = scalar_lea.sflag [#allocation4], %s544_s7 }
 0x197   : > { %751 = dma.done.wait (!%p670_p2), %s545_s8, 2048  }
 0x198   : > { %753 = vsyncadd (!%p670_p2), %s545_s8, 4294965248  ;;  %p16_p3 = scmp.ge.s32.totalorder %s829_s18, 4   ;;  %s1071_s12 = smov %s760_s13 }
 0x199   : > { %s1072_s13 = smov %s764_s14  ;;  %s1073_s14 = smov %s841_s21 }
 0x19a   : > { %s1074_s15 = smov %s829_s18  ;;  %18 = sbr.rel (!%p16_p3) target bundleno = 5 (0x5), region = 93 }
 0x1a1   :  { %550 = vsyncpa [#allocation3], 1 }
 0x1a2   :  { %552 = vsyncpa [#allocation3 + $0x1], 1 }
 0x1a3   :  { %553 = vsyncpa [#allocation4], 1 }
 0x1a4   :  { %555 = vsyncpa [#allocation4 + $0x1], 1 }

</bundles_post_ra>
